<compile_context>
chip_gen: v6e
topology: v6e:2x2x1
jax: 0.10.0
libtpu: 0.0.40
codegen_flags: <defaults>
</compile_context>

<pallas_src>
import math

import jax
import jax.numpy as jnp
from jax import lax
from jax.experimental import pallas as pl
from jax.experimental.pallas import tpu as pltpu

_SUBLANE = 8                 # batch is the sublane axis -> 8-row granularity
_DEFAULT_MAX_TILE_B = 2048   # rows per grid step; raise to 4096-8192 on v7x


def _round_up(n, m):
    return ((n + m - 1) // m) * m


def _make_fused_kernel(num_layers, compute_dtype):
    """Kernel refs: [x, w0, b0, ..., w_{L-1}, b_{L-1},
                     z0, h0, ..., z_{L-2}, h_{L-2}, logits]."""

    def kernel(*refs):
        x_ref = refs[0]
        w_refs = [refs[1 + 2 * i] for i in range(num_layers)]
        b_refs = [refs[2 + 2 * i] for i in range(num_layers)]
        out_refs = refs[1 + 2 * num_layers:]

        h = x_ref[...].astype(compute_dtype)        # (tile_b, in) bf16
        oi = 0
        for li in range(num_layers):
            # z = h @ W^T : contract last dim of h with last dim of W(out,in);
            # bf16 operands, f32 MXU accumulate, no transpose materialized.
            z = lax.dot_general(
                h, w_refs[li][...],
                dimension_numbers=(((1,), (1,)), ((), ())),
                preferred_element_type=jnp.float32)
            z = z + b_refs[li][...]                 # bias (1, out) broadcasts
            out_refs[oi][...] = z                   # linear combination (f32)
            oi += 1
            if li < num_layers - 1:
                hz = jnp.maximum(z, 0.0)
                out_refs[oi][...] = hz              # activation (f32)
                oi += 1
                h = hz.astype(compute_dtype)        # feed next layer in bf16

    return kernel


def _fused_mlp_pallas(prepped_params, x2, compute_dtype=jnp.bfloat16,
                      max_tile_b=_DEFAULT_MAX_TILE_B):
    """x2: (B, in) f32.  Returns (zs, hs) lists in (B, out) layout, f32."""
    B, in_size = x2.shape
    num_layers = len(prepped_params)
    out_sizes = [w.shape[0] for (w, _) in prepped_params]

    # --- batch tiling: batch is the sublane axis (8-row granularity).
    # Balance the number of grid steps and keep padding waste < one tile.
    b8 = _round_up(max(B, 1), _SUBLANE)
    n_tiles = pl.cdiv(b8, max_tile_b)
    tile_b = _round_up(pl.cdiv(b8, n_tiles), _SUBLANE)
    b_pad = n_tiles * tile_b
    grid = (n_tiles,)

    # Input stays f32 (cast to bf16 in-kernel); pad only when needed.
    x_in = x2 if b_pad == B else jnp.pad(x2, ((0, b_pad - B), (0, 0)))

    inputs = [x_in]
    in_specs = [pl.BlockSpec((tile_b, in_size), lambda i: (i, 0))]
    for (w, b) in prepped_params:
        inputs += [w, b]
        in_specs += [
            pl.BlockSpec(w.shape, lambda i: (0, 0)),   # weights resident in VMEM
            pl.BlockSpec(b.shape, lambda i: (0, 0)),   # bias (1, out) resident
        ]

    out_shapes, out_specs = [], []
    for li, out_i in enumerate(out_sizes):
        n_outs = 2 if li < num_layers - 1 else 1       # hidden: z and h; last: z
        for _ in range(n_outs):
            out_shapes.append(jax.ShapeDtypeStruct((b_pad, out_i), jnp.float32))
            out_specs.append(pl.BlockSpec((tile_b, out_i), lambda i: (i, 0)))

    flops = sum(2 * b_pad * w.shape[0] * w.shape[1] for (w, _) in prepped_params)
    bytes_accessed = (
        x_in.size * x_in.dtype.itemsize
        + sum(w.size * w.dtype.itemsize + b.size * b.dtype.itemsize
              for (w, b) in prepped_params)
        + sum(math.prod(s.shape) * 4 for s in out_shapes))

    outs = pl.pallas_call(
        _make_fused_kernel(num_layers, compute_dtype),
        grid=grid,
        out_shape=tuple(out_shapes),
        in_specs=in_specs,
        out_specs=tuple(out_specs),
        compiler_params=pltpu.CompilerParams(
            dimension_semantics=("parallel",),        # pipelined; 2 TCs on v7x
            vmem_limit_bytes=32 * 1024 * 1024,        # raise v5e's 16 MiB default
        ),
        cost_estimate=pl.CostEstimate(
            flops=flops, transcendentals=0, bytes_accessed=bytes_accessed),
    )(*inputs)

    # Outputs are already in (B, out) layout; only strip batch padding (rare:
    # B not a multiple of 8 or of the chosen tile).
    if b_pad != B:
        outs = [o[:B] for o in outs]

    zs, hs, idx = [], [], 0
    for li in range(num_layers):
        zs.append(outs[idx]); idx += 1
        if li < num_layers - 1:
            hs.append(outs[idx]); idx += 1
    return zs, hs


def init_fast_grad_mlp_params(hidden_sizes, key):
    """PyTorch nn.Linear-style init; weight (out, in), bias (out,)."""
    assert len(hidden_sizes) >= 2
    params = []
    for i in range(len(hidden_sizes) - 1):
        fan_in, fan_out = hidden_sizes[i], hidden_sizes[i + 1]
        key, wk, bk = jax.random.split(key, 3)
        bound = 1.0 / math.sqrt(fan_in)
        w = jax.random.uniform(wk, (fan_out, fan_in), jnp.float32, -bound, bound)
        b = jax.random.uniform(bk, (fan_out,), jnp.float32, -bound, bound)
        params.append((w, b))
    return params


def prepare_params(params, compute_dtype=jnp.bfloat16):
    """One-time layout/dtype prep (nothing per forward call): weights stay in
    PyTorch (out, in) order (dot_general contracts the 'in' dims directly),
    cast to bf16 for the MXU; biases become f32 (1, out) rows."""
    return [(w.astype(compute_dtype), b.reshape(1, -1).astype(jnp.float32))
            for (w, b) in params]


def fast_grad_mlp_forward(prepped_params, x, input_size,
                          compute_dtype=jnp.bfloat16,
                          max_tile_b=_DEFAULT_MAX_TILE_B):
    """Mirrors FastGradMLP.forward: returns (logits, activations, linearCombs);
    activations[0] is the flattened input, as in the PyTorch module."""
    x2 = x.reshape(-1, input_size)
    zs, hs = _fused_mlp_pallas(prepped_params, x2, compute_dtype, max_tile_b)
    activations = [x2] + hs
    linear_combs = zs            # zs[-1] is the logits
    # TODO(synk): requires_grad_/retain_grad have no JAX equivalent; per-example
    # gradients are obtained via jax.vjp/jax.grad on this pure function.
    return zs[-1], activations, linear_combs


def _reference_forward(raw_params, x, input_size, compute_dtype=jnp.bfloat16):
    """Plain-JAX reference with the same bf16 matmul rounding as the kernel."""
    out = x.reshape(-1, input_size)
    activations = [out]
    linear_combs = []
    for li, (w, b) in enumerate(raw_params):
        z = jnp.dot(out.astype(compute_dtype), w.T.astype(compute_dtype),
                    preferred_element_type=jnp.float32) + b
        linear_combs.append(z)
        if li < len(raw_params) - 1:
            out = jnp.maximum(z, 0.0)
            activations.append(out)
    return linear_combs[-1], activations, linear_combs


def _assert_close(got, want, name, atol=2e-3, rtol=2e-3):
    assert got.shape == want.shape, f"{name}: shape {got.shape} vs {want.shape}"
    assert jnp.allclose(got, want, atol=atol, rtol=rtol), f"mismatch: {name}"


if __name__ == "__main__":
    hidden_sizes = [16, 32, 24, 8]          # input=16, two hidden layers, output=8
    key = jax.random.PRNGKey(0)
    key, pkey, xkey, xbkey, xtkey = jax.random.split(key, 5)

    raw_params = init_fast_grad_mlp_params(hidden_sizes, pkey)
    params = prepare_params(raw_params)

    # Image-like batch; forward flattens to (-1, 16) -> batch 2 (padded to 8 rows).
    x = jax.random.normal(xkey, (2, 4, 4), jnp.float32)
    logits, activations, linear_combs = fast_grad_mlp_forward(
        params, x, hidden_sizes[0])
    jax.block_until_ready(logits)
    jax.block_until_ready(activations)
    jax.block_until_ready(linear_combs)

    ref_logits, ref_acts, ref_zs = _reference_forward(
        raw_params, x, hidden_sizes[0])
    _assert_close(logits, ref_logits, "logits")
    assert len(activations) == len(hidden_sizes) - 1   # input + each hidden act
    assert len(linear_combs) == len(hidden_sizes) - 1  # each hidden z + logits
    for i, (got, want) in enumerate(zip(activations, ref_acts)):
        _assert_close(got, want, f"activations[{i}]")
    for i, (got, want) in enumerate(zip(linear_combs, ref_zs)):
        _assert_close(got, want, f"linearCombs[{i}]")

    # Larger batch: 600 is a multiple of 8 -> single 600-row tile, zero padding.
    xb = jax.random.normal(xbkey, (600, hidden_sizes[0]), jnp.float32)
    logits_b, acts_b, zs_b = fast_grad_mlp_forward(params, xb, hidden_sizes[0])
    jax.block_until_ready(logits_b)
    ref_logits_b, ref_acts_b, ref_zs_b = _reference_forward(
        raw_params, xb, hidden_sizes[0])
    _assert_close(logits_b, ref_logits_b, "logits(batch=600)")
    for i, (got, want) in enumerate(zip(acts_b, ref_acts_b)):
        _assert_close(got, want, f"acts(batch=600)[{i}]")
    for i, (got, want) in enumerate(zip(zs_b, ref_zs_b)):
        _assert_close(got, want, f"zs(batch=600)[{i}]")

    # Ragged batch + forced multi-step "parallel" grid (exercise pad/slice path).
    xt = jax.random.normal(xtkey, (603, hidden_sizes[0]), jnp.float32)
    logits_t, acts_t, zs_t = fast_grad_mlp_forward(
        params, xt, hidden_sizes[0], max_tile_b=256)
    jax.block_until_ready(logits_t)
    ref_logits_t, ref_acts_t, ref_zs_t = _reference_forward(
        raw_params, xt, hidden_sizes[0])
    _assert_close(logits_t, ref_logits_t, "logits(batch=603,multi-tile)")
    _assert_close(acts_t[1], ref_acts_t[1], "acts(batch=603)[1]")
    _assert_close(zs_t[0], ref_zs_t[0], "zs(batch=603)[0]")

    print("KERNEL_OK")
</pallas_src>

<mosaic_0001>
module attributes {stable_mosaic.version = 11 : i64} {
  func.func @kernel(%arg0: i32, %arg1: memref<8x16xf32, #tpu.memory_space<vmem>>, %arg2: memref<32x16xbf16, #tpu.memory_space<vmem>>, %arg3: memref<1x32xf32, #tpu.memory_space<vmem>>, %arg4: memref<24x32xbf16, #tpu.memory_space<vmem>>, %arg5: memref<1x24xf32, #tpu.memory_space<vmem>>, %arg6: memref<8x24xbf16, #tpu.memory_space<vmem>>, %arg7: memref<1x8xf32, #tpu.memory_space<vmem>>, %arg8: memref<8x32xf32, #tpu.memory_space<vmem>>, %arg9: memref<8x32xf32, #tpu.memory_space<vmem>>, %arg10: memref<8x24xf32, #tpu.memory_space<vmem>>, %arg11: memref<8x24xf32, #tpu.memory_space<vmem>>, %arg12: memref<8x8xf32, #tpu.memory_space<vmem>>) attributes {dimension_semantics = [#tpu.dimension_semantics<parallel>], iteration_bounds = array<i64: 1>, scalar_prefetch = 0 : i64, scratch_operands = 0 : i64, tpu.core_type = #tpu.core_type<tc>, window_params = [{transform_indices = @transform_0, window_bounds = array<i64: 8, 16>}, {pipeline_mode = #tpu.pipeline_mode<synchronous>, transform_indices = @transform_1, window_bounds = array<i64: 32, 16>}, {pipeline_mode = #tpu.pipeline_mode<synchronous>, transform_indices = @transform_2, window_bounds = array<i64: 1, 32>}, {pipeline_mode = #tpu.pipeline_mode<synchronous>, transform_indices = @transform_3, window_bounds = array<i64: 24, 32>}, {pipeline_mode = #tpu.pipeline_mode<synchronous>, transform_indices = @transform_4, window_bounds = array<i64: 1, 24>}, {pipeline_mode = #tpu.pipeline_mode<synchronous>, transform_indices = @transform_5, window_bounds = array<i64: 8, 24>}, {pipeline_mode = #tpu.pipeline_mode<synchronous>, transform_indices = @transform_6, window_bounds = array<i64: 1, 8>}, {transform_indices = @transform_7, window_bounds = array<i64: 8, 32>}, {transform_indices = @transform_8, window_bounds = array<i64: 8, 32>}, {transform_indices = @transform_9, window_bounds = array<i64: 8, 24>}, {transform_indices = @transform_10, window_bounds = array<i64: 8, 24>}, {transform_indices = @transform_11, window_bounds = array<i64: 8, 8>}]} {
    %c0 = arith.constant 0 : index
    %c0_0 = arith.constant 0 : index
    %0 = vector.load %arg1[%c0, %c0_0] : memref<8x16xf32, #tpu.memory_space<vmem>>, vector<8x16xf32>
    %1 = arith.truncf %0 : vector<8x16xf32> to vector<8x16xbf16>
    %c0_1 = arith.constant 0 : index
    %c0_2 = arith.constant 0 : index
    %2 = vector.load %arg2[%c0_1, %c0_2] : memref<32x16xbf16, #tpu.memory_space<vmem>>, vector<32x16xbf16>
    %cst = arith.constant dense<0.000000e+00> : vector<8x32xf32>
    %3 = tpu.matmul %1, %2, %cst {dimension_numbers = #tpu.dot_dimension_numbers<[1], [1], [0], [0], [0, 0, 1, 0], [], []>} : vector<8x16xbf16>, vector<32x16xbf16>, vector<8x32xf32> -> vector<8x32xf32>
    %c0_3 = arith.constant 0 : index
    %c0_4 = arith.constant 0 : index
    %4 = vector.load %arg3[%c0_3, %c0_4] : memref<1x32xf32, #tpu.memory_space<vmem>>, vector<1x32xf32>
    %5 = vector.broadcast %4 : vector<1x32xf32> to vector<8x32xf32>
    %6 = arith.addf %3, %5 : vector<8x32xf32>
    %c0_5 = arith.constant 0 : index
    %c0_6 = arith.constant 0 : index
    %7 = vector.load %arg8[%c0_5, %c0_6] : memref<8x32xf32, #tpu.memory_space<vmem>>, vector<8x32xf32>
    tpu.vector_store %arg8[%c0_5, %c0_6], %6 {strides = array<i32>} : memref<8x32xf32, #tpu.memory_space<vmem>>, vector<8x32xf32>,
    %cst_7 = arith.constant 0.000000e+00 : f32
    %8 = vector.broadcast %cst_7 : f32 to vector<8x32xf32>
    %9 = arith.maximumf %6, %8 : vector<8x32xf32>
    %c0_8 = arith.constant 0 : index
    %c0_9 = arith.constant 0 : index
    %10 = vector.load %arg9[%c0_8, %c0_9] : memref<8x32xf32, #tpu.memory_space<vmem>>, vector<8x32xf32>
    tpu.vector_store %arg9[%c0_8, %c0_9], %9 {strides = array<i32>} : memref<8x32xf32, #tpu.memory_space<vmem>>, vector<8x32xf32>,
    %11 = arith.truncf %9 : vector<8x32xf32> to vector<8x32xbf16>
    %c0_10 = arith.constant 0 : index
    %c0_11 = arith.constant 0 : index
    %12 = vector.load %arg4[%c0_10, %c0_11] : memref<24x32xbf16, #tpu.memory_space<vmem>>, vector<24x32xbf16>
    %cst_12 = arith.constant dense<0.000000e+00> : vector<8x24xf32>
    %13 = tpu.matmul %11, %12, %cst_12 {dimension_numbers = #tpu.dot_dimension_numbers<[1], [1], [0], [0], [0, 0, 1, 0], [], []>} : vector<8x32xbf16>, vector<24x32xbf16>, vector<8x24xf32> -> vector<8x24xf32>
    %c0_13 = arith.constant 0 : index
    %c0_14 = arith.constant 0 : index
    %14 = vector.load %arg5[%c0_13, %c0_14] : memref<1x24xf32, #tpu.memory_space<vmem>>, vector<1x24xf32>
    %15 = vector.broadcast %14 : vector<1x24xf32> to vector<8x24xf32>
    %16 = arith.addf %13, %15 : vector<8x24xf32>
    %c0_15 = arith.constant 0 : index
    %c0_16 = arith.constant 0 : index
    %17 = vector.load %arg10[%c0_15, %c0_16] : memref<8x24xf32, #tpu.memory_space<vmem>>, vector<8x24xf32>
    tpu.vector_store %arg10[%c0_15, %c0_16], %16 {strides = array<i32>} : memref<8x24xf32, #tpu.memory_space<vmem>>, vector<8x24xf32>,
    %cst_17 = arith.constant 0.000000e+00 : f32
    %18 = vector.broadcast %cst_17 : f32 to vector<8x24xf32>
    %19 = arith.maximumf %16, %18 : vector<8x24xf32>
    %c0_18 = arith.constant 0 : index
    %c0_19 = arith.constant 0 : index
    %20 = vector.load %arg11[%c0_18, %c0_19] : memref<8x24xf32, #tpu.memory_space<vmem>>, vector<8x24xf32>
    tpu.vector_store %arg11[%c0_18, %c0_19], %19 {strides = array<i32>} : memref<8x24xf32, #tpu.memory_space<vmem>>, vector<8x24xf32>,
    %21 = arith.truncf %19 : vector<8x24xf32> to vector<8x24xbf16>
    %c0_20 = arith.constant 0 : index
    %c0_21 = arith.constant 0 : index
    %22 = vector.load %arg6[%c0_20, %c0_21] : memref<8x24xbf16, #tpu.memory_space<vmem>>, vector<8x24xbf16>
    %cst_22 = arith.constant dense<0.000000e+00> : vector<8x8xf32>
    %23 = tpu.matmul %21, %22, %cst_22 {dimension_numbers = #tpu.dot_dimension_numbers<[1], [1], [0], [0], [0, 0, 1, 0], [], []>} : vector<8x24xbf16>, vector<8x24xbf16>, vector<8x8xf32> -> vector<8x8xf32>
    %c0_23 = arith.constant 0 : index
    %c0_24 = arith.constant 0 : index
    %24 = vector.load %arg7[%c0_23, %c0_24] : memref<1x8xf32, #tpu.memory_space<vmem>>, vector<1x8xf32>
    %25 = vector.broadcast %24 : vector<1x8xf32> to vector<8x8xf32>
    %26 = arith.addf %23, %25 : vector<8x8xf32>
    %c0_25 = arith.constant 0 : index
    %c0_26 = arith.constant 0 : index
    %27 = vector.load %arg12[%c0_25, %c0_26] : memref<8x8xf32, #tpu.memory_space<vmem>>, vector<8x8xf32>
    tpu.vector_store %arg12[%c0_25, %c0_26], %26 {strides = array<i32>} : memref<8x8xf32, #tpu.memory_space<vmem>>, vector<8x8xf32>,
    return
  }
  func.func @transform_0(%arg0: i32) -> (i32, i32) {
    %c0_i32 = arith.constant 0 : i32
    %c0_i32_0 = arith.constant 0 : i32
    return %arg0, %c0_i32 : i32, i32
  }
  func.func @transform_1(%arg0: i32) -> (i32, i32) {
    %c0_i32 = arith.constant 0 : i32
    %c0_i32_0 = arith.constant 0 : i32
    %c0_i32_1 = arith.constant 0 : i32
    return %c0_i32, %c0_i32_0 : i32, i32
  }
  func.func @transform_2(%arg0: i32) -> (i32, i32) {
    %c0_i32 = arith.constant 0 : i32
    %c0_i32_0 = arith.constant 0 : i32
    %c0_i32_1 = arith.constant 0 : i32
    return %c0_i32, %c0_i32_0 : i32, i32
  }
  func.func @transform_3(%arg0: i32) -> (i32, i32) {
    %c0_i32 = arith.constant 0 : i32
    %c0_i32_0 = arith.constant 0 : i32
    %c0_i32_1 = arith.constant 0 : i32
    return %c0_i32, %c0_i32_0 : i32, i32
  }
  func.func @transform_4(%arg0: i32) -> (i32, i32) {
    %c0_i32 = arith.constant 0 : i32
    %c0_i32_0 = arith.constant 0 : i32
    %c0_i32_1 = arith.constant 0 : i32
    return %c0_i32, %c0_i32_0 : i32, i32
  }
  func.func @transform_5(%arg0: i32) -> (i32, i32) {
    %c0_i32 = arith.constant 0 : i32
    %c0_i32_0 = arith.constant 0 : i32
    %c0_i32_1 = arith.constant 0 : i32
    return %c0_i32, %c0_i32_0 : i32, i32
  }
  func.func @transform_6(%arg0: i32) -> (i32, i32) {
    %c0_i32 = arith.constant 0 : i32
    %c0_i32_0 = arith.constant 0 : i32
    %c0_i32_1 = arith.constant 0 : i32
    return %c0_i32, %c0_i32_0 : i32, i32
  }
  func.func @transform_7(%arg0: i32) -> (i32, i32) {
    %c0_i32 = arith.constant 0 : i32
    %c0_i32_0 = arith.constant 0 : i32
    return %arg0, %c0_i32 : i32, i32
  }
  func.func @transform_8(%arg0: i32) -> (i32, i32) {
    %c0_i32 = arith.constant 0 : i32
    %c0_i32_0 = arith.constant 0 : i32
    return %arg0, %c0_i32 : i32, i32
  }
  func.func @transform_9(%arg0: i32) -> (i32, i32) {
    %c0_i32 = arith.constant 0 : i32
    %c0_i32_0 = arith.constant 0 : i32
    return %arg0, %c0_i32 : i32, i32
  }
  func.func @transform_10(%arg0: i32) -> (i32, i32) {
    %c0_i32 = arith.constant 0 : i32
    %c0_i32_0 = arith.constant 0 : i32
    return %arg0, %c0_i32 : i32, i32
  }
  func.func @transform_11(%arg0: i32) -> (i32, i32) {
    %c0_i32 = arith.constant 0 : i32
    %c0_i32_0 = arith.constant 0 : i32
    return %arg0, %c0_i32 : i32, i32
  }
}

</mosaic_0001>

<bundles_post_ra>
// kernel: tpu_custom_call.1
= control target key start
LH: loop header
LB: loop body
LE: loop exit
PB: predicated region body
PF: predicated region fallthrough
CT: control target
= control target key end

     0   :  { %17 = vsyncpa [#allocation3], 0  ;;  %s587_s0 = inlined_call_operand.vmem [shape: f32[8,16], index: 0, kind: input, shape index: {}]   ;;  %s588_s1 = inlined_call_operand.vmem [shape: bf16[32,16], index: 1, kind: input, shape index: {}]   ;;  %s589_s2 = inlined_call_operand.vmem [shape: f32[1,32], index: 2, kind: input, shape index: {}]   ;;  %s590_s3 = inlined_call_operand.vmem [shape: bf16[24,32], index: 3, kind: input, shape index: {}]   ;;  %s591_s4 = inlined_call_operand.vmem [shape: f32[1,24], index: 4, kind: input, shape index: {}]   ;;  %s592_s5 = inlined_call_operand.vmem [shape: bf16[8,24], index: 5, kind: input, shape index: {}]   ;;  %s593_s6 = inlined_call_operand.vmem [shape: f32[1,8], index: 6, kind: input, shape index: {}]   ;;  %s594_s7 = inlined_call_operand.hbm [shape: f32[8,32], index: 7, kind: output, shape index: {0}]   ;;  %s595_s8 = inlined_call_operand.hbm [shape: f32[8,32], index: 8, kind: output, shape index: {1}]   ;;  %s596_s9 = inlined_call_operand.hbm [shape: f32[8,24], index: 9, kind: output, shape index: {2}]   ;;  %s597_s10 = inlined_call_operand.hbm [shape: f32[8,24], index: 10, kind: output, shape index: {3}]   ;;  %s598_s11 = inlined_call_operand.hbm [shape: f32[8,8], index: 11, kind: output, shape index: {4}]  }
   0x1   :  { %18 = vsyncpa [#allocation5], 0  ;;  %v356_v0 = vld [vmem:[%s588_s1 + $0x8] sm:$0xff]   ;;  %v466_v1 = vmov 0.0   ;;  %vm58_vm0 = vcmask 130048   ;;  %vm108_vm1 = vcmask 261120  }
   0x2   :  { %327 = vmatprep.subr.bf16.mxu0 %v466_v1  ;;  %335 = vmatprep.subr.bf16.mxu1 %v466_v1  ;;  %v66_v2 = vsel %vm58_vm0, %v356_v0, 0  ;;  %v357_v3 = vld [vmem:[%s588_s1] sm:$0xff]   ;;  %vm467_vm2 = vmmov 0   ;;  %v358_v4 = vld [vmem:[%s590_s3 + $0x8] ss:$0 sps:$4 sm:$0xff]  }
   0x3   :  { %328 = vmatpush3.bf16.xpose.msra.mxu0 %v66_v2  ;;  %331 = vmatprep.mubr.msk.bf16.mxu0 %vm467_vm2, %v466_v1 }
   0x4   :  { %329 = vmatprep.subr.bf16.mxu0 %v466_v1  ;;  %339 = vmatprep.mubr.msk.bf16.mxu1 %vm467_vm2, %v466_v1 }
   0x5   :  { %19 = vsyncpa [#allocation8], 0  ;;  %v138_v5 = vsel %vm108_vm1, %v358_v4, 0  ;;  %v63_v6 = vsel %vm58_vm0, %v357_v3, 0  ;;  %v35_v7 = vld [vmem:[%s587_s0] sm:$0xff]  ;;  %vm180_vm3 = vcmask 195584  }
   0x6   :  { %336 = vmatpush3.bf16.xpose.msra.mxu1 %v138_v5  ;;  %v36_v8 = vpack.c.bf16 %v35_v7, %v35_v7  ;;  %v359_v9 = vld [vmem:[%s590_s3] sm:$0xff]   ;;  %s469_s30 = smov [#allocation7]  }
   0x7   :  { %337 = vmatprep.subr.bf16.mxu1 %v466_v1  ;;  %v135_v10 = vsel %vm108_vm1, %v359_v9, 0  ;;  %v185_v11 = vld [vmem:[%s592_s5] sm:$0xf]  ;;  %s277_s12 = sshll.u32 %s469_s30, 4  ;;  %s278_s12 = int_to_ptr.vmem [resolvable:$true] %s277_s12 }
   0x8   :  { %v197_v12 = vsel %vm180_vm3, %v185_v11, 0  ;;  %v309_v13 = vld [vmem:[%s589_s2] ss:$0 sm:$0xff]  ;;  %s468_s2 = smov [#allocation4]  }
   0x9   :  { %v313_v21 = vld [vmem:[%s591_s4] ss:$0 sm:$0xff]  ;;  %s257_s29 = sshll.u32 %s468_s2, 4  ;;  %s258_s29 = int_to_ptr.vmem [resolvable:$true] %s257_s29 }
   0xa   :  { %s360_s4 = scalar_lea.vmem %s258_s29, 128  ;;  %p365_p1 = scmp.lt.s32.totalorder %s258_s29, %s258_s29 }
   0xb   :  { %330 = vmatpush3.bf16.xpose.msra.mxu0 %v63_v6  ;;  %p361_p0 = scmp.ne.s32.totalorder %s258_s29, %s360_s4  ;;  %p366_p2 = scmp.lt.s32.totalorder %s360_s4, %s360_s4 }
   0xc   :  { %343 = vmatprep.subr.bf16.mxu0 %v466_v1 }
   0xd   :  { %p367_p3 = por %p366_p2, %p365_p1 }
   0xe   :  { %338 = vmatpush3.bf16.xpose.msra.mxu1 %v135_v10 }
   0xf   :  { %p368_p4 = pnand %p367_p3, %p361_p0 }
  0x12   :  { %332 = vmatmul.mubr.msk.bf16.vlgmr.msra.gmra.mxu0 %vm58_vm0, %v36_v8 }
  0x13   :  { %345 = vmatprep.mubr.msk.bf16.mxu0 %vm467_vm2, %v466_v1  ;;  %344 = vmatpush3.bf16.xpose.msra.mxu0 %v197_v12 }
  0xd2   :  { %v102_v14 = vpop.f32.mrf.mxu0 }
  0xd3   :  { %v103_v15 = vadd.f32 %v309_v13, %v102_v14 }
  0xd4   :  { %v333_v16 = vpop.f32.mrf.mxu0 }
  0xd5   :  { %v110_v17 = vmax.f32 %v103_v15, 0.0  ;;  %109 = vst.msk [vmem:[#allocation2] sm:$0xff] %vm108_vm1, %v103_v15 }
  0xd6   :  { %v105_v18 = vpop.f32.mrf.mxu0 }
  0xd7   :  { %v112_v19 = vpack.c.bf16 %v110_v17, %v110_v17  ;;  %111 = vst.msk [vmem:[#allocation4] sm:$0xff] %vm108_vm1, %v110_v17 }
  0xd8   :  { %v334_v20 = vpop.f32.mrf.mxu0 }
  0xd9   :  { %340 = vmatmul.mubr.msk.bf16.vlgmr.msra.gmra.mxu1 %vm108_vm1, %v112_v19 }
 0x199   :  { %v174_v22 = vpop.f32.mrf.mxu1 }
 0x19a   :  { %v175_v23 = vadd.f32 %v313_v21, %v174_v22 }
 0x19b   :  { %v341_v24 = vpop.f32.mrf.mxu1 }
 0x19c   :  { %v182_v25 = vmax.f32 %v175_v23, 0.0  ;;  %181 = vst.msk [vmem:[#allocation6] sm:$0xff] %vm180_vm3, %v175_v23 }
 0x19d   :  { %v177_v26 = vpop.f32.mrf.mxu1 }
 0x19e   :  { %v184_v27 = vpack.c.bf16 %v182_v25, %v182_v25  ;;  %183 = vst.msk [vmem:[#allocation7] sm:$0xff] %vm180_vm3, %v182_v25 }
 0x19f   :  { %v342_v28 = vpop.f32.mrf.mxu1 }
 0x1a0   :  { %346 = vmatmul.mubr.msk.bf16.vlgmr.msra.gmra.mxu0 %vm180_vm3, %v184_v27 }
 0x1a1   :  { %371 = shalt.err (!%p368_p4)
}
 0x1a2   :  { %260 = dma.vmem_to_hbm [thread:$0]  %s258_s29, 128, %s595_s8, [#allocation5]  }
 0x1a3   :  { %s380_s15 = scalar_lea.vmem %s278_s12, 128  ;;  %p385_p6 = scmp.lt.s32.totalorder %s278_s12, %s278_s12 }
 0x1a4   :  { %p381_p5 = scmp.ne.s32.totalorder %s278_s12, %s380_s15  ;;  %p386_p7 = scmp.lt.s32.totalorder %s380_s15, %s380_s15 }
 0x1a6   :  { %p387_p8 = por %p386_p7, %p385_p6 }
 0x1a8   :  { %p388_p9 = pnand %p387_p8, %p381_p5 }
 0x1aa   :  { %391 = shalt.err (!%p388_p9)
}
 0x1ab   :  { %280 = dma.vmem_to_hbm [thread:$0]  %s278_s12, 128, %s597_s10, [#allocation8]  }
 0x1ac   :  { %s470_s18 = smov [#allocation2]   ;;  %s471_s20 = smov [#allocation6]  }
 0x1ad   :  { %s247_s19 = sshll.u32 %s470_s18, 4  ;;  %s267_s21 = sshll.u32 %s471_s20, 4  ;;  %s248_s19 = int_to_ptr.vmem [resolvable:$true] %s247_s19  ;;  %s268_s21 = int_to_ptr.vmem [resolvable:$true] %s267_s21 }
 0x1ae   :  { %s400_s22 = scalar_lea.vmem %s248_s19, 128  ;;  %p405_p11 = scmp.lt.s32.totalorder %s248_s19, %s248_s19 }
 0x1af   :  { %p401_p10 = scmp.ne.s32.totalorder %s248_s19, %s400_s22  ;;  %p406_p12 = scmp.lt.s32.totalorder %s400_s22, %s400_s22 }
 0x1b1   :  { %p407_p13 = por %p406_p12, %p405_p11 }
 0x1b3   :  { %p408_p0 = pnand %p407_p13, %p401_p10 }
 0x1b5   :  { %411 = shalt.err (!%p408_p0)
}
 0x1b6   :  { %250 = dma.vmem_to_hbm [thread:$0]  %s248_s19, 128, %s594_s7, [#allocation3]  }
 0x1b7   :  { %s420_s24 = scalar_lea.vmem %s268_s21, 128  ;;  %p425_p2 = scmp.lt.s32.totalorder %s268_s21, %s268_s21 }
 0x1b8   :  { %p421_p1 = scmp.ne.s32.totalorder %s268_s21, %s420_s24  ;;  %p426_p3 = scmp.lt.s32.totalorder %s420_s24, %s420_s24 }
 0x1ba   :  { %p427_p4 = por %p426_p3, %p425_p2 }
 0x1bc   :  { %p428_p5 = pnand %p427_p4, %p421_p1 }
 0x1be   :  { %431 = shalt.err (!%p428_p5)
}
 0x1bf   :  { %270 = dma.vmem_to_hbm [thread:$0]  %s268_s21, 128, %s596_s9, [#allocation5]   ;;  %v317_v29 = vld [vmem:[%s593_s6] ss:$0 sm:$0xff]  ;;  %vm239_vm4 = vcmask 64512  }
 0x1c0   :  { %s472_s27 = smov [#allocation9]  }
 0x1c1   :  { %s287_s0 = sshll.u32 %s472_s27, 4  ;;  %s288_s0 = int_to_ptr.vmem [resolvable:$true] %s287_s0 }
 0x1c2   :  { %s440_s7 = scalar_lea.vmem %s288_s0, 128  ;;  %p445_p7 = scmp.lt.s32.totalorder %s288_s0, %s288_s0 }
 0x1c3   :  { %p441_p6 = scmp.ne.s32.totalorder %s288_s0, %s440_s7  ;;  %p446_p8 = scmp.lt.s32.totalorder %s440_s7, %s440_s7 }
 0x1c5   :  { %p447_p9 = por %p446_p8, %p445_p7 }
 0x1c7   :  { %p448_p10 = pnand %p447_p9, %p441_p6 }
 0x260   :  { %v233_v30 = vpop.f32.mrf.mxu0 }
 0x261   :  { %v234_v31 = vadd.f32 %v317_v29, %v233_v30 }
 0x262   :  { %v347_v32 = vpop.f32.mrf.mxu0 }
 0x263   :  { %240 = vst.msk [vmem:[#allocation9] sm:$0xff] %vm239_vm4, %v234_v31 }
 0x264   :  { %v236_v33 = vpop.f32.mrf.mxu0 }
 0x265   :  { %451 = shalt.err (!%p448_p10)
}
 0x266   :  { %290 = dma.vmem_to_hbm [thread:$0]  %s288_s0, 128, %s598_s11, [#allocation8]   ;;  %v348_v34 = vpop.f32.mrf.mxu0 }
 0x267   :  { %460 = dma.done.wait [#allocation3], 128  }
 0x268   :  { %461 = vsyncadd [#allocation3], 4294967168 }
 0x269   :  { %462 = dma.done.wait [#allocation5], 256  }
 0x26a   :  { %463 = vsyncadd [#allocation5], 4294967040 }
 0x26b   :  { %464 = dma.done.wait [#allocation8], 256  }
 0x26c   :  { %465 = vsyncadd [#allocation8], 4294967040 }
 0x26d   :  { %306 = vsyncpa [#allocation3], 1 }
 0x26e   :  { %307 = vsyncpa [#allocation5], 1 }
 0x26f   :  { %308 = vsyncpa [#allocation8], 1 }

</bundles_post_ra>
